<compile_context>
chip_gen: v7x
topology: tpu7x:2x2x1
jax: 0.10.0
libtpu: 0.0.40
codegen_flags: <defaults>
</compile_context>

<pallas_src>
import jax
import jax.numpy as jnp
from jax import lax
from jax.experimental import pallas as pl
from jax.experimental.pallas import tpu as pltpu


def _one_hot_kernel(x_ref, o_ref, *, class_offset):
    # x_ref : (1, 1, T) int32   (one batch element, one HW tile)
    # o_ref : (1, C, T) out-dtype
    C = o_ref.shape[1]
    T = o_ref.shape[2]
    # Fold the implicit-class offset into the (1, T) labels (cheap) instead of
    # the (C, T) iota (C x wider VALU op).
    labels = x_ref[0] - class_offset                     # (1, T) int32
    cls = lax.broadcasted_iota(jnp.int32, (C, T), 0)     # (C, T) int32
    o_ref[0] = (labels == cls).astype(o_ref.dtype)


def _round_up(n, m):
    return ((n + m - 1) // m) * m


def _choose_tile(hw, C, itemsize):
    """Pick a 128-aligned HW tile so the (C, T) output block stays ~<= 4 MiB
    per buffer (double-buffered -> ~8 MiB), safe on v5e/v6e/v7x scoped VMEM."""
    budget_bytes = 4 * 1024 * 1024
    max_t = budget_bytes // max(1, C * itemsize)
    max_t = max(128, (max_t // 128) * 128)
    hw_pad = _round_up(hw, 128)
    if hw_pad <= max_t:
        # Small problem: one lane-dense tile per batch element (no extra
        # grid-step overhead).
        return hw_pad, hw_pad
    t = max_t
    return t, _round_up(hw, t)


def label_to_one_hot(x, nb_classes, implicit=False, dtype=jnp.float32):
    """x: (B, 1, *spatial) integer labels -> (B, C, *spatial) one-hot."""
    if nb_classes is None:
        # TODO(synk): nitorch infers nb_classes from x.max()+1 when None;
        # here we require it explicitly (glue-level jnp.max would also work).
        raise ValueError("nb_classes must be provided")
    B = x.shape[0]
    assert x.shape[1] == 1, "expected a single label channel"
    spatial = x.shape[2:]
    hw = 1
    for s in spatial:
        hw *= s

    C = nb_classes - 1 if implicit else nb_classes
    class_offset = 1 if implicit else 0

    itemsize = jnp.dtype(dtype).itemsize
    tile, hw_pad = _choose_tile(hw, C, itemsize)
    num_tiles = hw_pad // tile

    x_flat = x.reshape(B, 1, hw).astype(jnp.int32)
    if hw_pad != hw:
        # Pad with -1 (maps to no class); the padded region is sliced off
        # below, but keeping it all-zero is tidy either way.
        x_flat = jnp.pad(x_flat, ((0, 0), (0, 0), (0, hw_pad - hw)),
                         constant_values=-1)

    out = pl.pallas_call(
        lambda x_ref, o_ref: _one_hot_kernel(
            x_ref, o_ref, class_offset=class_offset),
        out_shape=jax.ShapeDtypeStruct((B, C, hw_pad), dtype),
        grid_spec=pltpu.PrefetchScalarGridSpec(
            num_scalar_prefetch=0,
            grid=(B, num_tiles),
            in_specs=[pl.BlockSpec((1, 1, tile), lambda b, t: (b, 0, t))],
            out_specs=pl.BlockSpec((1, C, tile), lambda b, t: (b, 0, t)),
        ),
        compiler_params=pltpu.CompilerParams(
            dimension_semantics=("parallel", "parallel")),
    )(x_flat)

    if hw_pad != hw:
        out = out[:, :, :hw]
    return out.reshape((B, C) + spatial)


if __name__ == "__main__":
    key = jax.random.PRNGKey(0)
    B, H, W = 2, 16, 16
    nb_classes = 4

    # Deterministic synthetic label map: (B, 1, H, W) with labels in [0, C)
    x = jax.random.randint(key, (B, 1, H, W), 0, nb_classes, dtype=jnp.int32)

    # explicit one-hot
    y = label_to_one_hot(x, nb_classes=nb_classes, implicit=False)
    y = jax.block_until_ready(y)

    ref = jax.nn.one_hot(x[:, 0], nb_classes, dtype=jnp.float32)   # (B,H,W,C)
    ref = jnp.transpose(ref, (0, 3, 1, 2))                         # (B,C,H,W)
    assert y.shape == (B, nb_classes, H, W)
    assert y.dtype == jnp.float32
    assert bool(jnp.all(y == ref))

    # implicit one-hot (class 0 dropped)
    y_imp = label_to_one_hot(x, nb_classes=nb_classes, implicit=True)
    y_imp = jax.block_until_ready(y_imp)
    ref_imp = ref[:, 1:]
    assert y_imp.shape == (B, nb_classes - 1, H, W)
    assert bool(jnp.all(y_imp == ref_imp))

    print("KERNEL_OK")
</pallas_src>

<mosaic_0001>
module attributes {stable_mosaic.version = 11 : i64} {
  func.func @_lambda_(%arg0: i32, %arg1: i32, %arg2: memref<1x1x256xi32, #tpu.memory_space<vmem>>, %arg3: memref<1x4x256xf32, #tpu.memory_space<vmem>>) attributes {dimension_semantics = [#tpu.dimension_semantics<parallel>, #tpu.dimension_semantics<parallel>], iteration_bounds = array<i64: 2, 1>, scalar_prefetch = 0 : i64, scratch_operands = 0 : i64, tpu.core_type = #tpu.core_type<tc>, window_params = [{transform_indices = @transform_0, window_bounds = array<i64: 1, 1, 256>}, {transform_indices = @transform_1, window_bounds = array<i64: 1, 4, 256>}]} {
    %c0 = arith.constant 0 : index
    %c0_0 = arith.constant 0 : index
    %c0_1 = arith.constant 0 : index
    %0 = vector.load %arg2[%c0, %c0_0, %c0_1] : memref<1x1x256xi32, #tpu.memory_space<vmem>>, vector<1x1x256xi32>
    %1 = vector.shape_cast %0 : vector<1x1x256xi32> to vector<1x256xi32>
    %c0_i32 = arith.constant 0 : i32
    %2 = vector.broadcast %c0_i32 : i32 to vector<1x256xi32>
    %3 = arith.subi %1, %2 : vector<1x256xi32>
    %4 = tpu.iota {dimensions = array<i32: 0>} : vector<4x256xi32>
    %5 = vector.broadcast %3 : vector<1x256xi32> to vector<4x256xi32>
    %6 = arith.cmpi eq, %5, %4 : vector<4x256xi32>
    %7 = arith.extui %6 : vector<4x256xi1> to vector<4x256xi32>
    %8 = arith.sitofp %7 : vector<4x256xi32> to vector<4x256xf32>
    %c0_2 = arith.constant 0 : index
    %c0_3 = arith.constant 0 : index
    %c0_4 = arith.constant 0 : index
    %9 = vector.load %arg3[%c0_2, %c0_3, %c0_4] : memref<1x4x256xf32, #tpu.memory_space<vmem>>, vector<1x4x256xf32>
    %10 = vector.shape_cast %9 : vector<1x4x256xf32> to vector<4x256xf32>
    %11 = vector.shape_cast %8 : vector<4x256xf32> to vector<1x4x256xf32>
    tpu.vector_store %arg3[%c0_2, %c0_3, %c0_4], %11 {strides = array<i32>} : memref<1x4x256xf32, #tpu.memory_space<vmem>>, vector<1x4x256xf32>,
    return
  }
  func.func @transform_0(%arg0: i32, %arg1: i32) -> (i32, i32, i32) {
    %c0_i32 = arith.constant 0 : i32
    %c0_i32_0 = arith.constant 0 : i32
    return %arg0, %c0_i32, %arg1 : i32, i32, i32
  }
  func.func @transform_1(%arg0: i32, %arg1: i32) -> (i32, i32, i32) {
    %c0_i32 = arith.constant 0 : i32
    %c0_i32_0 = arith.constant 0 : i32
    return %arg0, %c0_i32, %arg1 : i32, i32, i32
  }
}

</mosaic_0001>

<bundles_post_ra>
// kernel: tpu_custom_call.1
= control target key start
LH: loop header
LB: loop body
LE: loop exit
PB: predicated region body
PF: predicated region fallthrough
CT: control target
= control target key end

     0   :  { %6 = vsyncpa [#allocation3], 0  ;;  %s658_s0 = inlined_call_operand.hbm [shape: s32[2,1,256], index: 0, kind: input, shape index: {}]   ;;  %s659_s1 = inlined_call_operand.hbm [shape: f32[2,4,256], index: 1, kind: output, shape index: {}]  }
   0x1   :  { %8 = vsyncpa [#allocation3 + $0x1], 0 }
   0x2   :  { %9 = vsyncpa [#allocation4], 0 }
   0x3   :  { %11 = vsyncpa [#allocation4 + $0x1], 0  ;;  %s485_s6 = smov 0   ;;  %s487_s7 = smov 0  }
   0x4   :  { %s489_s8 = smov 0   ;;  %s491_s9 = smov 0  }
   0x5   :  { %s493_s10 = smov 0   ;;  %s495_s11 = smov 0  }
   0x6 LB: > { %s276_s12 = sadd.s32 4294967295, %s470_s11   ;;  %s277_s13 = sadd.s32 4294967294, %s470_s11   ;;  %s470_s11 = sphi %s495_s11, %s17_s11   ;;  %s466_s10 = sphi %s493_s10, %s675_s10   ;;  %s462_s9 = sphi %s491_s9, %s674_s9   ;;  %s458_s8 = sphi %s489_s8, %s673_s8   ;;  %s454_s7 = sphi %s487_s7, %s672_s7   ;;  %s450_s6 = sphi %s485_s6, %s671_s6  }
   0x7   : > { %s29_s14 = sadd.s32 1, %s466_s10  ;;  %s38_s15 = sadd.s32 1, %s458_s8 }
   0x8   : > { %p31_p0 = scmp.ge.s32.totalorder %s29_s14, 2  ;;  %p45_p1 = scmp.ne.s32.totalorder %s458_s8, %s454_s7 }
   0x9   : > { %p46_p2 = scmp.eq.s32.totalorder %s470_s11, 0  ;;  %p51_p3 = scmp.ne.s32.totalorder %s454_s7, %s450_s6 }
   0xa   : > { %s677_s14 = smov (%p31_p0, %s29_s14), 0  ;;  %p52_p5 = scmp.eq.s32.totalorder %s276_s12, 0 }
   0xb   : > { %p526_p4 = por %p46_p2, %p45_p1  ;;  %s33_s17 = ssub.s32 %s466_s10, %s677_s14 }
   0xc   : > { %p77_p6 = scmp.eq.s32.totalorder %s276_s12, 1  ;;  %p36_p7 = scmp.eq.s32.totalorder %s33_s17, 0 }
   0xd   : > { %p532_p8 = por %p52_p5, %p51_p3  ;;  %p83_p10 = scmp.eq.s32.totalorder %s277_s13, 1 }
   0xe   : > { %p536_p9 = por %p77_p6, %p45_p1  ;;  %p307_p13 = scmp.lt.s32.totalorder %s470_s11, 2 }
   0xf   : > { %s541_s20 = scalar_select %p36_p7, %s458_s8, %s38_s15  }
  0x10   : > { %s663_s19 = scalar_select %p536_p9, 1, 0 }
  0x11   : > { %p543_p11 = por %p83_p10, %p51_p3  ;;  %s103_s22 = sand.u32 1, %s458_s8  }
  0x12   : > { %s280_s23 = sshll.u32 %s103_s22, 1  ;;  %s293_s24 = sshll.u32 %s466_s10, 5 }
  0x13   : > { %s664_s21 = scalar_select %p543_p11, 1, 0 }
  0x14   : > { %s554_s27 = scalar_lea.hbm %s658_s0, %s293_s24  ;;  %s107_s28 = scalar_lea.vmem [#allocation2], %s280_s23 }
  0x15   : > { %s117_s29 = sshll.u32 %s107_s28, 4  ;;  %p560_p0 = pnand %p307_p13, %p526_p4  ;;  %s556_s29 = int_to_ptr.vmem [resolvable:$true] %s117_s29 }
  0x16   : > { %s104_s2 = scalar_lea.sflag [#allocation3], %s103_s22  ;;  %s358_s3 = scalar_lea.hbm %s554_s27, 32 }
  0x17   : > { %p359_p3 = scmp.ne.s32.totalorder %s554_s27, %s358_s3  ;;  %p360_p5 = pneg %p560_p0 }
  0x18   : > { %s363_s12 = scalar_lea.hbm %s658_s0, 64  ;;  %p364_p4 = scmp.lt.u32.totalorder %s554_s27, %s658_s0 }
  0x19   : > { %p361_p6 = pnand %p360_p5, %p359_p3  ;;  %p365_p10 = scmp.lt.u32.totalorder %s363_s12, %s358_s3 }
  0x1a   : > { %p367_p12 = scmp.lt.u32.totalorder %s358_s3, %s554_s27 }
  0x1b   : > { %p362_p7 = pneg %p361_p6  ;;  %p366_p13 = por %p365_p10, %p364_p4 }
  0x1d   : > { %p368_p1 = por %p367_p12, %p366_p13 }
  0x1f   : > { %p369_p2 = pnand %p368_p1, %p362_p7 }
  0x21   : > { %372 = shalt.err (!%p369_p2)
}
  0x22   : > { %s373_s16 = scalar_lea.vmem %s556_s29, 32  ;;  %s472_s17 = smov [#allocation2]  }
  0x23   : > { %p374_p3 = scmp.ne.s32.totalorder %s556_s29, %s373_s16  ;;  %s378_s22 = sshll.u32 %s472_s17, 4  ;;  %s379_s22 = int_to_ptr.vmem [resolvable:$false] %s378_s22 }
  0x24   : > { %s380_s23 = scalar_lea.vmem %s379_s22, 64  ;;  %p381_p9 = scmp.lt.s32.totalorder %s556_s29, %s379_s22 }
  0x25   : > { %p376_p6 = pnand %p374_p3, %p360_p5  ;;  %p382_p4 = scmp.lt.s32.totalorder %s380_s23, %s373_s16 }
  0x27   : > { %p377_p11 = pneg %p376_p6  ;;  %p383_p10 = por %p382_p4, %p381_p9 }
  0x29   : > { %p384_p12 = pnand %p383_p10, %p377_p11 }
  0x2b   : > { %387 = shalt.err (!%p384_p12)
}
  0x2c   : > { %302 = dma.hbm_to_vmem [thread:$0]  (!%p560_p0), %s554_s27, 32, %s556_s29, %s104_s2  }
  0x2d   : > { %p666_p1 = scmp.lt.s32.totalorder %s470_s11, 3  ;;  %p667_p2 = scmp.ge.s32.totalorder %s470_s11, 1 }
  0x2f   : > { %p123_p5 = pnand %p667_p2, %p666_p1 }
  0x30   : > { %s596_s24 = sand.u32 (!%p123_p5), 1, %s454_s7  }
  0x31   : > { %126 = sbr.rel (%p123_p5) target bundleno = 83 (0x53), region = 24  ;;  %s284_s25 = sshll.u32 (!%p123_p5), %s596_s24, 1 }
  0x32   : > { %s129_s26 = scalar_lea.sflag (!%p123_p5), [#allocation3], %s596_s24  ;;  %s132_s28 = scalar_lea.vmem (!%p123_p5), [#allocation2], %s284_s25 }
  0x38   : > { %441 = dma.done.wait (%p532_p8), %s129_s26, 32  }
  0x39   : > { %443 = vsyncadd (%p532_p8), %s129_s26, 4294967264  ;;  %v154_v0 = vlaneseq  ;;  %s285_s27 = sshll.u32 %s596_s24, 3  ;;  %v153_v4 = vld [vmem:[%s132_s28] sm:$0x3]  ;;  %s294_s2 = sshll.u32 %s462_s9, 7  ;;  %v473_v7 = vmov 0.0  }
  0x3a   : > { %s150_s29 = scalar_lea.vmem [#allocation5], %s285_s27  ;;  %s611_s4 = scalar_lea.hbm %s659_s1, %s294_s2 }
  0x3b   : > { %v155_v1 = vshrl.u32 %v154_v0, 7  ;;  %s192_s30 = sshll.u32 %s150_s29, 4  ;;  %s176_s5 = scalar_lea.sflag [#allocation4], %s596_s24  ;;  %s606_s30 = int_to_ptr.vmem [resolvable:$true] %s192_s30 }
  0x3c   : > { %s388_s12 = scalar_lea.vmem %s606_s30, 128  ;;  %p668_p9 = scmp.ne.s32.totalorder %s663_s19, 0 }
  0x3d   : > { %v158_v2 = vsub.s32 0, %v155_v1  ;;  %v162_v3 = vsub.s32 1, %v155_v1  ;;  %p389_p8 = scmp.ne.s32.totalorder %s606_s30, %s388_s12  ;;  %s474_s9 = smov [#allocation5]  }
  0x3e   : > { %s392_s13 = sshll.u32 %s474_s9, 4  ;;  %s393_s13 = int_to_ptr.vmem [resolvable:$false] %s392_s13 }
  0x3f   : > { %v159_v5 = vrot.slane %v153_v4, %v158_v2  ;;  %v163_v6 = vrot.slane %v153_v4, %v162_v3  ;;  %p390_p11 = pnand %p389_p8, %p668_p9  ;;  %s394_s15 = scalar_lea.vmem %s393_s13, 256 }
  0x40   : > { %p395_p7 = scmp.lt.s32.totalorder %s606_s30, %s393_s13  ;;  %p396_p13 = scmp.lt.s32.totalorder %s394_s15, %s388_s12 }
  0x41   : > { %vm164_vm0 = vcmp.eq.s32.totalorder %v159_v5, %v155_v1  ;;  %vm165_vm1 = vcmp.eq.s32.totalorder %v163_v6, %v155_v1  ;;  %p391_p0 = pneg %p390_p11 }
  0x42   : > { %v286_v8 = vsel %vm164_vm0, 1.0, %v473_v7  ;;  %v287_v9 = vsel %vm165_vm1, 1.0, %v473_v7  ;;  %p397_p3 = por %p396_p13, %p395_p7 }
  0x43   : > { %v172_v10 = vcombine.low %v286_v8, %v287_v9 }
  0x44   : > { %p398_p6 = pnand %p397_p3, %p391_p0 }
  0x45   : > { %174 = vst [vmem:[%s150_s29] sm:$0xff] %v172_v10 }
  0x46   : > { %401 = shalt.err (!%p398_p6)
}
  0x47   : > { %s402_s16 = scalar_lea.hbm %s611_s4, 128  ;;  %s406_s23 = scalar_lea.hbm %s659_s1, 256 }
  0x48   : > { %p403_p4 = scmp.ne.s32.totalorder %s611_s4, %s402_s16  ;;  %p407_p1 = scmp.lt.u32.totalorder %s611_s4, %s659_s1 }
  0x49   : > { %p408_p2 = scmp.lt.u32.totalorder %s406_s23, %s402_s16  ;;  %p410_p8 = scmp.lt.u32.totalorder %s402_s16, %s611_s4 }
  0x4a   : > { %p404_p10 = pnand %p403_p4, %p668_p9 }
  0x4b   : > { %p409_p5 = por %p408_p2, %p407_p1 }
  0x4c   : > { %p405_p12 = pneg %p404_p10 }
  0x4d   : > { %p411_p11 = por %p410_p8, %p409_p5 }
  0x4f   : > { %p412_p0 = pnand %p411_p11, %p405_p12 }
  0x51   : > { %415 = shalt.err (!%p412_p0)
}
  0x52   : > { %297 = dma.vmem_to_hbm [thread:$0]  (%p668_p9), %s606_s30, 128, %s611_s4, %s176_s5  }
  0x53 PF: > { %s204_s26 = sand.u32 1, %s450_s6   ;;  %p669_p7 = scmp.ne.s32.totalorder %s664_s21, 0 }
  0x54   : > { %p670_p13 = scmp.ge.s32.totalorder %s470_s11, 2  ;;  %s205_s28 = scalar_lea.sflag [#allocation4], %s204_s26 }
  0x56   : > { %p304_p3 = pnand %p670_p13, %p669_p7 }
  0x58   : > { %445 = dma.done.wait (!%p304_p3), %s205_s28, 128  }
  0x59   : > { %447 = vsyncadd (!%p304_p3), %s205_s28, 4294967168  ;;  %s17_s11 = sadd.s32 1, %s470_s11   ;;  %s671_s6 = smov %s454_s7 }
  0x5a   : > { %p14_p6 = scmp.ge.s32.totalorder %s17_s11, 4   ;;  %s672_s7 = smov %s458_s8 }
  0x5b   : > { %s673_s8 = smov %s541_s20  ;;  %s674_s9 = smov %s466_s10 }
  0x5c   : > { %s675_s10 = smov %s677_s14  ;;  %16 = sbr.rel (!%p14_p6) target bundleno = 6 (0x6), region = 69 }
  0x63   :  { %210 = vsyncpa [#allocation3], 1 }
  0x64   :  { %212 = vsyncpa [#allocation3 + $0x1], 1 }
  0x65   :  { %213 = vsyncpa [#allocation4], 1 }
  0x66   :  { %215 = vsyncpa [#allocation4 + $0x1], 1 }

</bundles_post_ra>
